<compile_context>
chip_gen: v7x
topology: tpu7x:2x2x1
jax: 0.10.0
libtpu: 0.0.40
codegen_flags: <defaults>
</compile_context>

<pallas_src>
import functools
import jax
import jax.numpy as jnp
from jax import lax
from jax.experimental import pallas as pl
from jax.experimental.pallas import tpu as pltpu  # noqa: F401  (kept for TPU-specific tuning hooks)


# ---------------------------------------------------------------------------
# temporal_conv_layer:  out = (conv_t[:c_out] + conv_c) * sigmoid(conv_t[c_out:])
# One matmul over the (c_in*kt) contraction with [w_c | w_t] fused, whole slab.
# ---------------------------------------------------------------------------
def _temporal_kernel(x_ref, w_ref, b_ref, o_ref):
    y = jnp.dot(x_ref[...], w_ref[...], preferred_element_type=jnp.float32) + b_ref[...]
    co = o_ref.shape[-1]
    # columns: [0:co]=conv_c, [co:3co]=conv_t
    o_ref[...] = (y[:, co:2 * co] + y[:, :co]) * jax.nn.sigmoid(y[:, 2 * co:3 * co])


def temporal_conv(x, w_c, b_c, w_t, b_t, kt):
    # x: (B, Ci, T, N); w_c: (Co, Ci, kt); w_t: (2*Co, Ci, kt)
    B, Ci, T, N = x.shape
    Co = w_c.shape[0]
    To = T - kt + 1
    # stack shifted time windows -> rows of length Ci*kt (ci-major, dt-minor)
    slabs = [x[:, :, dt:dt + To, :] for dt in range(kt)]              # each (B,Ci,To,N)
    xs = jnp.stack(slabs, axis=2)                                     # (B,Ci,kt,To,N)
    xs = jnp.transpose(xs, (0, 3, 4, 1, 2)).reshape(B * To * N, Ci * kt)
    wc = jnp.transpose(w_c, (1, 2, 0)).reshape(Ci * kt, Co)
    wt = jnp.transpose(w_t, (1, 2, 0)).reshape(Ci * kt, 2 * Co)
    w = jnp.concatenate([wc, wt], axis=1)                             # (K, 3*Co)
    b = jnp.concatenate([b_c, b_t]).reshape(1, 3 * Co)
    M = xs.shape[0]
    out = pl.pallas_call(
        _temporal_kernel,
        out_shape=jax.ShapeDtypeStruct((M, Co), jnp.float32),
    )(xs, w, b)
    return jnp.transpose(out.reshape(B, To, N, Co), (0, 3, 1, 2))     # (B,Co,To,N)


# ---------------------------------------------------------------------------
# spatio_conv_layer: relu( einsum('iok,knm,bitm->botn') + b + x )
# theta and Lk are fused (data-independent, parameter-side) into a single
# (Ci*N, Co*N) weight so the whole (B*T) batch is one matmul.
# ---------------------------------------------------------------------------
def _spatio_kernel(x_ref, w_ref, b_ref, o_ref):
    x = x_ref[...]                                                    # (B*T, C*N)
    gc = jnp.dot(x, w_ref[...], preferred_element_type=jnp.float32) + b_ref[...]
    o_ref[...] = jnp.maximum(gc + x, 0.0)


def spatio_conv(x, Lk, theta, bias):
    # x: (B, C, T, N); Lk: (ks, N, N); theta: (C, C, ks); bias: (C,)
    B, C, T, N = x.shape
    # fused graph-conv weight: W[(i,m),(o,n)] = sum_k theta[i,o,k] * Lk[k,n,m]
    # (pure parameter preprocessing, size (C*N)^2 -- tiny)
    W = jnp.einsum('iok,knm->imon', theta, Lk).reshape(C * N, C * N)
    b_flat = jnp.repeat(bias, N).reshape(1, C * N)                    # broadcast over o only
    xr = jnp.transpose(x, (0, 2, 1, 3)).reshape(B * T, C * N)         # rows (b,t), cols (i,m)
    out = pl.pallas_call(
        _spatio_kernel,
        out_shape=jax.ShapeDtypeStruct((B * T, C * N), jnp.float32),
    )(xr, W, b_flat)
    return jnp.transpose(out.reshape(B, T, C, N), (0, 2, 1, 3))       # (B,C,T,N)


# ---------------------------------------------------------------------------
# LSTM recurrence only (fc / conv / LN moved to a batched epilogue kernel).
# Single Pallas call; gates fused into two (·,4H=128)-wide matmuls per step;
# in-kernel fori_loop(unroll=True) over T carries (h, c) in registers.
# ---------------------------------------------------------------------------
def _lstm_kernel(x_ref, wih_ref, whh_ref, bg_ref, h_out_ref):
    T, M, _ = x_ref.shape
    H = whh_ref.shape[0]

    def step(t, carry):
        h, c = carry
        x_t = x_ref[t]                                                # (M, C)
        gates = (jnp.dot(x_t, wih_ref[...], preferred_element_type=jnp.float32)
                 + jnp.dot(h, whh_ref[...], preferred_element_type=jnp.float32)
                 + bg_ref[...])                                       # (M, 4H) lane-dense
        # PyTorch gate order along the 4H axis: i, f, g, o
        i_g = jax.nn.sigmoid(gates[:, 0:H])
        f_g = jax.nn.sigmoid(gates[:, H:2 * H])
        g_g = jnp.tanh(gates[:, 2 * H:3 * H])
        o_g = jax.nn.sigmoid(gates[:, 3 * H:4 * H])
        c_new = f_g * c + i_g * g_g
        h_new = o_g * jnp.tanh(c_new)
        h_out_ref[t] = h_new
        return h_new, c_new

    h0 = jnp.zeros((M, H), jnp.float32)
    c0 = jnp.zeros((M, H), jnp.float32)
    lax.fori_loop(0, T, step, (h0, c0), unroll=True)


def lstm_layer(x, p):
    # x: (B, C, T, N) -> h_seq: (T, B*N, H), rows ordered b-major / n-minor
    # (matches x.permute(0,3,2,1).view(-1, t, c) in the reference module)
    B, C, T, N = x.shape
    H = 32
    M = B * N
    x_seq = jnp.transpose(x, (2, 0, 3, 1)).reshape(T, M, C)
    wih = p["w_ih"].T                                                 # (C, 4H), cols [i|f|g|o]
    whh = p["w_hh"].T                                                 # (H, 4H)
    bg = (p["b_ih"] + p["b_hh"]).reshape(1, 4 * H)
    h_seq = pl.pallas_call(
        _lstm_kernel,
        out_shape=jax.ShapeDtypeStruct((T, M, H), jnp.float32),
    )(x_seq, wih, whh, bg)
    return h_seq


# ---------------------------------------------------------------------------
# Batched epilogue:  fc -> 1x1 conv -> relu + residual -> LayerNorm([N, OC])
# One call over all (b, t) slices; LN statistics are joint over (N, OC).
# ---------------------------------------------------------------------------
def _epilogue_ln_kernel(h_ref, wfc_ref, bfc_ref, wcv_ref, bcv_ref,
                        lnw_ref, lnb_ref, o_ref, *, eps):
    BT, N, H = h_ref.shape
    OC = wfc_ref.shape[1]
    h2 = h_ref[...].reshape(BT * N, H)                                # leading-dim collapse (free)
    fc = jnp.dot(h2, wfc_ref[...], preferred_element_type=jnp.float32) + bfc_ref[...]
    cv = jnp.dot(fc, wcv_ref[...], preferred_element_type=jnp.float32) + bcv_ref[...]
    y = (jnp.maximum(cv, 0.0) + fc).reshape(BT, N, OC)                # relu(conv)+residual
    cnt = N * OC
    mu = jnp.sum(jnp.sum(y, axis=2, keepdims=True), axis=1, keepdims=True) / cnt
    d = y - mu
    var = jnp.sum(jnp.sum(d * d, axis=2, keepdims=True), axis=1, keepdims=True) / cnt
    o_ref[...] = d * lax.rsqrt(var + eps) * lnw_ref[...] + lnb_ref[...]


def lstm_epilogue_layernorm(h_seq, p, B, N):
    # h_seq: (T, B*N, H) -> output (B, OC, T, N)
    T, M, H = h_seq.shape
    OC = p["w_fc"].shape[0]
    # regroup so each row block is one (b, t) slice of (N, H) -> LN groups
    hs = jnp.transpose(h_seq.reshape(T, B, N, H), (1, 0, 2, 3)).reshape(B * T, N, H)
    out = pl.pallas_call(
        functools.partial(_epilogue_ln_kernel, eps=1e-5),
        out_shape=jax.ShapeDtypeStruct((B * T, N, OC), jnp.float32),
    )(hs,
      p["w_fc"].T, p["b_fc"].reshape(1, OC),
      p["w_cv"].T, p["b_cv"].reshape(1, OC),
      p["ln_w"], p["ln_b"])
    return jnp.transpose(out.reshape(B, T, N, OC), (0, 3, 1, 2))      # (B, OC, T, N)


# ---------------------------------------------------------------------------
# GCRNN_Unit / GDL_Module glue + deterministic parameter init
# ---------------------------------------------------------------------------
def init_gcrnn_params(key, kt, ks, in_c, hide_c, out_c, nodes):
    H = 32
    s = 0.1
    keys = jax.random.split(key, 16)
    p = dict(
        wc=jax.random.normal(keys[0], (hide_c, in_c, kt)) * s,
        bc=jax.random.normal(keys[1], (hide_c,)) * s,
        wt=jax.random.normal(keys[2], (2 * hide_c, in_c, kt)) * s,
        bt=jax.random.normal(keys[3], (2 * hide_c,)) * s,
        theta=jax.random.normal(keys[4], (hide_c, hide_c, ks)) * s,
        sb=jax.random.normal(keys[5], (hide_c,)) * s,
        w_ih=jax.random.normal(keys[6], (4 * H, hide_c)) * s,
        w_hh=jax.random.normal(keys[7], (4 * H, H)) * s,
        b_ih=jax.random.normal(keys[8], (4 * H,)) * s,
        b_hh=jax.random.normal(keys[9], (4 * H,)) * s,
        w_fc=jax.random.normal(keys[10], (out_c, H)) * s,
        b_fc=jax.random.normal(keys[11], (out_c,)) * s,
        w_cv=jax.random.normal(keys[12], (out_c, out_c)) * s,
        b_cv=jax.random.normal(keys[13], (out_c,)) * s,
        ln_w=1.0 + jax.random.normal(keys[14], (nodes, out_c)) * 0.01,
        ln_b=jax.random.normal(keys[15], (nodes, out_c)) * 0.01,
    )
    return jax.tree.map(lambda a: a.astype(jnp.float32), p)


def gcrnn_unit(x, p, Lk, kt):
    x_t1 = temporal_conv(x, p["wc"], p["bc"], p["wt"], p["bt"], kt)
    x_s = spatio_conv(x_t1, Lk, p["theta"], p["sb"])
    h_seq = lstm_layer(x_s, p)
    B, _, _, N = x_s.shape
    x_ln = lstm_epilogue_layernorm(h_seq, p, B, N)
    # Dropout is identity at inference. (nn.LSTM dropout with num_layers=1 is a no-op.)
    return x_ln


def gdl_module(x, params1, params2, Lk, kt):
    st_x1 = gcrnn_unit(x, params1, Lk, kt)
    st_x2 = gcrnn_unit(st_x1, params2, Lk, kt)
    return st_x2


if __name__ == "__main__":
    key = jax.random.PRNGKey(0)
    k_x, k_lk, k_p1, k_p2 = jax.random.split(key, 4)

    # small shapes consistent with the module
    B, T, N = 2, 12, 8
    kt, ks = 3, 3
    cs_iho = ((2, 4, 4), (4, 4, 4))     # (in, hide, out) per GCRNN unit; out1 == in2
    dropout = 0.1                       # unused at inference

    x = jax.random.normal(k_x, (B, cs_iho[0][0], T, N), dtype=jnp.float32)
    Lk = jax.random.normal(k_lk, (ks, N, N), dtype=jnp.float32) * 0.3

    params1 = init_gcrnn_params(k_p1, kt, ks, *cs_iho[0], N)
    params2 = init_gcrnn_params(k_p2, kt, ks, *cs_iho[1], N)

    out = gdl_module(x, params1, params2, Lk, kt)
    out = jax.block_until_ready(out)
    assert out.shape == (B, cs_iho[1][2], T - 2 * (kt - 1), N), out.shape
    assert jnp.all(jnp.isfinite(out))
    print("KERNEL_OK")
</pallas_src>

<mosaic_0001>
module attributes {stable_mosaic.version = 11 : i64} {
  func.func @_temporal_kernel(%arg0: memref<160x6xf32, #tpu.memory_space<vmem>>, %arg1: memref<6x12xf32, #tpu.memory_space<vmem>>, %arg2: memref<1x12xf32, #tpu.memory_space<vmem>>, %arg3: memref<160x4xf32, #tpu.memory_space<vmem>>) attributes {dimension_semantics = [], scalar_prefetch = 0 : i64, scratch_operands = 0 : i64, tpu.core_type = #tpu.core_type<tc>} {
    %c0 = arith.constant 0 : index
    %c0_0 = arith.constant 0 : index
    %0 = vector.load %arg0[%c0, %c0_0] : memref<160x6xf32, #tpu.memory_space<vmem>>, vector<160x6xf32>
    %c0_1 = arith.constant 0 : index
    %c0_2 = arith.constant 0 : index
    %1 = vector.load %arg1[%c0_1, %c0_2] : memref<6x12xf32, #tpu.memory_space<vmem>>, vector<6x12xf32>
    %cst = arith.constant dense<0.000000e+00> : vector<160x12xf32>
    %2 = tpu.matmul %0, %1, %cst {dimension_numbers = #tpu.dot_dimension_numbers<[1], [0], [0], [1], [0, 0, 1, 1], [], []>} : vector<160x6xf32>, vector<6x12xf32>, vector<160x12xf32> -> vector<160x12xf32>
    %c0_3 = arith.constant 0 : index
    %c0_4 = arith.constant 0 : index
    %3 = vector.load %arg2[%c0_3, %c0_4] : memref<1x12xf32, #tpu.memory_space<vmem>>, vector<1x12xf32>
    %4 = vector.broadcast %3 : vector<1x12xf32> to vector<160x12xf32>
    %5 = arith.addf %2, %4 : vector<160x12xf32>
    %6 = vector.extract_strided_slice %5 {offsets = [0, 4], sizes = [160, 4], strides = [1, 1]} : vector<160x12xf32> to vector<160x4xf32>
    %7 = vector.extract_strided_slice %5 {offsets = [0, 0], sizes = [160, 4], strides = [1, 1]} : vector<160x12xf32> to vector<160x4xf32>
    %8 = arith.addf %6, %7 : vector<160x4xf32>
    %9 = vector.extract_strided_slice %5 {offsets = [0, 8], sizes = [160, 4], strides = [1, 1]} : vector<160x12xf32> to vector<160x4xf32>
    %10 = arith.negf %9 : vector<160x4xf32>
    %11 = math.exp %10 : vector<160x4xf32>
    %cst_5 = arith.constant 1.000000e+00 : f32
    %12 = vector.broadcast %cst_5 : f32 to vector<160x4xf32>
    %13 = arith.addf %12, %11 : vector<160x4xf32>
    %14 = arith.divf %12, %13 : vector<160x4xf32>
    %15 = arith.mulf %8, %14 : vector<160x4xf32>
    %c0_6 = arith.constant 0 : index
    %c0_7 = arith.constant 0 : index
    %16 = vector.load %arg3[%c0_6, %c0_7] : memref<160x4xf32, #tpu.memory_space<vmem>>, vector<160x4xf32>
    tpu.vector_store %arg3[%c0_6, %c0_7], %15 {strides = array<i32>} : memref<160x4xf32, #tpu.memory_space<vmem>>, vector<160x4xf32>,
    return
  }
}

</mosaic_0001>

<bundles_post_ra>
// kernel: tpu_custom_call.1
= control target key start
LH: loop header
LB: loop body
LE: loop exit
PB: predicated region body
PF: predicated region fallthrough
CT: control target
= control target key end

     0   :  { %vm103_vm0 = vcmask 1045504   ;;  %vm42_vm1 = vcmask 48128   ;;  %vm672_vm2 = vcmask 31744   ;;  %s1258_s1 = inlined_call_operand.vmem [shape: f32[6,12], index: 1, kind: input, shape index: {}]   ;;  %s1259_s0 = inlined_call_operand.vmem [shape: f32[160,6], index: 0, kind: input, shape index: {}]   ;;  %s1260_s2 = inlined_call_operand.vmem [shape: f32[1,12], index: 2, kind: input, shape index: {}]   ;;  %s1261_s3 = inlined_call_operand.vmem [shape: f32[160,4], index: 3, kind: output, shape index: {}]  }
   0x1   :  { %v34_v0 = vld [vmem:[%s1258_s1] sm:$0x3f]  ;;  %v24_v2 = vld [vmem:[%s1259_s0 + $0x50] sm:$0xff]  ;;  %v15_v3 = vld [vmem:[%s1259_s0 + $0x8] sm:$0xff] }
   0x2   :  { %v14_v1 = vld [vmem:[%s1259_s0] sm:$0xff]  ;;  %760 = vmatprep.subr.msk.mxu0 %vm103_vm0, %v34_v0  ;;  %792 = vmatprep.subr.msk.mxu1 %vm103_vm0, %v34_v0  ;;  %v25_v4 = vld [vmem:[%s1259_s0 + $0x58] sm:$0xff]  ;;  %v16_v5 = vld [vmem:[%s1259_s0 + $0x10] sm:$0xff] }
   0x3   :  { %761 = vmatpush3.msk.msra.mxu0 %vm103_vm0, %v34_v0  ;;  %793 = vmatpush3.msk.msra.mxu1 %vm103_vm0, %v34_v0  ;;  %v26_v6 = vld [vmem:[%s1259_s0 + $0x60] sm:$0xff]  ;;  %v17_v7 = vld [vmem:[%s1259_s0 + $0x18] sm:$0xff]  ;;  %v27_v8 = vld [vmem:[%s1259_s0 + $0x68] sm:$0xff] }
   0x4   :  { %762 = vmatprep.mubr.msk.f32.mxu0 %vm42_vm1, %v14_v1  ;;  %777 = vmatprep.mubr.msk.f32.mxu1 %vm42_vm1, %v24_v2  ;;  %v18_v9 = vld [vmem:[%s1259_s0 + $0x20] sm:$0xff]  ;;  %v28_v10 = vld [vmem:[%s1259_s0 + $0x70] sm:$0xff]  ;;  %v19_v11 = vld [vmem:[%s1259_s0 + $0x28] sm:$0xff] }
   0x5   :  { %763 = vmatmul.mubr.msk.f32.vlgmr.msra.gmra.mrb[0].mxu0 %vm42_vm1, %v15_v3  ;;  %778 = vmatmul.mubr.msk.f32.vlgmr.msra.gmra.mrb[0].mxu1 %vm42_vm1, %v25_v4  ;;  %v29_v12 = vld [vmem:[%s1259_s0 + $0x78] sm:$0xff]  ;;  %v20_v13 = vld [vmem:[%s1259_s0 + $0x30] sm:$0xff]  ;;  %v30_v14 = vld [vmem:[%s1259_s0 + $0x80] sm:$0xff] }
   0x6   :  { %765 = vmatprep.mubr.msk.f32.mxu0 %vm42_vm1, %v16_v5  ;;  %780 = vmatprep.mubr.msk.f32.mxu1 %vm42_vm1, %v26_v6  ;;  %v21_v15 = vld [vmem:[%s1259_s0 + $0x38] sm:$0xff]  ;;  %v31_v16 = vld [vmem:[%s1259_s0 + $0x88] sm:$0xff]  ;;  %v22_v17 = vld [vmem:[%s1259_s0 + $0x40] sm:$0xff] }
   0x7   :  { %v32_v18 = vld [vmem:[%s1259_s0 + $0x90] sm:$0xff]  ;;  %v23_v19 = vld [vmem:[%s1259_s0 + $0x48] sm:$0xff]  ;;  %v33_v20 = vld [vmem:[%s1259_s0 + $0x98] sm:$0xff]  ;;  %s876_s0 = smov 4  }
   0x8   :  { %v984_v21 = vld [vmem:[%s1260_s2] ss:$0 sm:$0xff]  ;;  %s877_s2 = smov 124  }
   0x9   :  { %766 = vmatmul.mubr.msk.f32.gmra.mrb[2].mxu0 %vm42_vm1, %v17_v7  ;;  %781 = vmatmul.mubr.msk.f32.gmra.mrb[2].mxu1 %vm42_vm1, %v27_v8 }
   0xa   :  { %768 = vmatprep.mubr.msk.f32.mxu0 %vm42_vm1, %v18_v9  ;;  %783 = vmatprep.mubr.msk.f32.mxu1 %vm42_vm1, %v28_v10 }
   0xd   :  { %769 = vmatmul.mubr.msk.f32.gmra.mrb[4].mxu0 %vm42_vm1, %v19_v11  ;;  %784 = vmatmul.mubr.msk.f32.gmra.mrb[4].mxu1 %vm42_vm1, %v29_v12 }
   0xe   :  { %771 = vmatprep.mubr.msk.f32.mxu0 %vm42_vm1, %v20_v13  ;;  %786 = vmatprep.mubr.msk.f32.mxu1 %vm42_vm1, %v30_v14 }
  0x11   :  { %772 = vmatmul.mubr.msk.f32.gmra.mrb[6].mxu0 %vm42_vm1, %v21_v15  ;;  %787 = vmatmul.mubr.msk.f32.gmra.mrb[6].mxu1 %vm42_vm1, %v31_v16 }
  0x12   :  { %774 = vmatprep.mubr.msk.f32.mxu0 %vm42_vm1, %v22_v17  ;;  %789 = vmatprep.mubr.msk.f32.mxu1 %vm42_vm1, %v32_v18 }
  0x15   :  { %775 = vmatmul.mubr.msk.f32.gmra.mrb[8].mxu0 %vm42_vm1, %v23_v19  ;;  %790 = vmatmul.mubr.msk.f32.gmra.mrb[8].mxu1 %vm42_vm1, %v33_v20 }
  0xd8   :  { %v764_v22 = vpop.f32.mrb[0].mxu0  ;;  %v779_v23 = vpop.f32.mrb[0].mxu1 }
  0xd9   :  { %v987_v24 = vadd.f32 %v764_v22, %v984_v21  ;;  %v990_v25 = vadd.f32 %v779_v23, %v984_v21  ;;  %v173_v26 = vpop.f32.mrb[1].mxu0  ;;  %v223_v27 = vpop.f32.mrb[1].mxu1 }
  0xda   :  { %v997_v30 = vadd.f32 %v984_v21, %v173_v26  ;;  %v1010_v37 = vadd.f32 %v984_v21, %v223_v27 }
  0xdb   :  { %314 = vrot.lane.b32.xlu1 %v990_v25, %s876_s0  ;;  %294 = vrot.lane.b32.xlu0 %v987_v24, %s876_s0  ;;  %v720_v40 = vmul.f32 -1.442695, %v987_v24  ;;  %v730_v48 = vmul.f32 -1.442695, %v990_v25 }
  0xdc   :  { %v767_v28 = vpop.f32.mrb[2].mxu0  ;;  %v782_v29 = vpop.f32.mrb[2].mxu1  ;;  %v719_v41 = vmul.f32 -1.442695, %v997_v30  ;;  %v729_v49 = vmul.f32 -1.442695, %v1010_v37 }
  0xdd   :  { %v1000_v31 = vadd.f32 %v767_v28, %v984_v21  ;;  %v183_v32 = vpop.f32.mrb[3].mxu0  ;;  %v233_v33 = vpop.f32.mrb[3].mxu1  ;;  %v1003_v34 = vadd.f32 %v782_v29, %v984_v21  ;;  %796 = vpow2.f32 %v720_v40 }
  0xde   :  { %v1019_v44 = vadd.f32 %v984_v21, %v183_v32  ;;  %v1022_v45 = vadd.f32 %v984_v21, %v233_v33  ;;  %798 = vpow2.f32 %v719_v41 }
  0xdf   :  { %298 = vrot.lane.b32.xlu1 %v1000_v31, %s876_s0  ;;  %292 = vrot.lane.b32.xlu0 %v997_v30, %s876_s0  ;;  %v722_v53 = vmul.f32 -1.442695, %v1000_v31  ;;  %800 = vpow2.f32 %v730_v48  ;;  %v732_v60 = vmul.f32 -1.442695, %v1003_v34 }
  0xe0   :  { %v770_v35 = vpop.f32.mrb[4].mxu0  ;;  %v785_v36 = vpop.f32.mrb[4].mxu1  ;;  %802 = vpow2.f32 %v729_v49  ;;  %v721_v57 = vmul.f32 -1.442695, %v1019_v44  ;;  %v731_v61 = vmul.f32 -1.442695, %v1022_v45 }
  0xe1   :  { %v193_v38 = vpop.f32.mrb[5].mxu0  ;;  %v243_v39 = vpop.f32.mrb[5].mxu1  ;;  %v1027_v50 = vadd.f32 %v770_v35, %v984_v21  ;;  %v1039_v58 = vadd.f32 %v785_v36, %v984_v21  ;;  %804 = vpow2.f32 %v722_v53 }
  0xe2   :  { %v1030_v51 = vadd.f32 %v984_v21, %v193_v38  ;;  %v1042_v59 = vadd.f32 %v984_v21, %v243_v39  ;;  %806 = vpow2.f32 %v721_v57 }
  0xe3   :  { %318 = vrot.lane.b32.xlu1 %v1003_v34, %s876_s0  ;;  %312 = vrot.lane.b32.xlu0 %v1010_v37, %s876_s0  ;;  %808 = vpow2.f32 %v732_v60  ;;  %v724_v1 = vmul.f32 -1.442695, %v1027_v50  ;;  %v734_v4 = vmul.f32 -1.442695, %v1039_v58 }
  0xe4   :  { %v773_v42 = vpop.f32.mrb[6].mxu0  ;;  %v788_v43 = vpop.f32.mrb[6].mxu1  ;;  %v723_v3 = vmul.f32 -1.442695, %v1030_v51  ;;  %810 = vpow2.f32 %v731_v61  ;;  %v733_v11 = vmul.f32 -1.442695, %v1042_v59 }
  0xe5   :  { %v203_v46 = vpop.f32.mrb[7].mxu0  ;;  %v253_v47 = vpop.f32.mrb[7].mxu1  ;;  %v1051_v62 = vadd.f32 %v773_v42, %v984_v21  ;;  %v1064_v6 = vadd.f32 %v788_v43, %v984_v21  ;;  %812 = vpow2.f32 %v724_v1 }
  0xe6   :  { %v1054_v63 = vadd.f32 %v984_v21, %v203_v46  ;;  %v1067_v7 = vadd.f32 %v984_v21, %v253_v47  ;;  %814 = vpow2.f32 %v723_v3 }
  0xe7   :  { %296 = vrot.lane.b32.xlu1 %v1019_v44, %s876_s0  ;;  %316 = vrot.lane.b32.xlu0 %v1022_v45, %s876_s0  ;;  %v797_v0 = vpop.eup %796  ;;  %816 = vpow2.f32 %v734_v4  ;;  %v726_v18 = vmul.f32 -1.442695, %v1051_v62  ;;  %v736_v33 = vmul.f32 -1.442695, %v1064_v6 }
  0xe8   :  { %v776_v52 = vpop.f32.mrb[8].mxu0  ;;  %v791_v55 = vpop.f32.mrb[8].mxu1  ;;  %v433_v5 = vadd.f32 1.0, %v797_v0  ;;  %v725_v22 = vmul.f32 -1.442695, %v1054_v63 }
  0xe9   :  { %v213_v54 = vpop.f32.mrb[9].mxu0  ;;  %v263_v56 = vpop.f32.mrb[9].mxu1  ;;  %v1075_v14 = vadd.f32 %v776_v52, %v984_v21  ;;  %v1087_v23 = vadd.f32 %v791_v55, %v984_v21 }
  0xea   :  { %v799_v2 = vpop.eup %798  ;;  %818 = vrcp.f32 %v433_v5  ;;  %v1078_v15 = vadd.f32 %v984_v21, %v213_v54  ;;  %v1090_v26 = vadd.f32 %v984_v21, %v263_v56  ;;  %v735_v21 = vmul.f32 -1.442695, %v1067_v7 }
  0xeb   :  { %302 = vrot.lane.b32.xlu1 %v1027_v50, %s876_s0  ;;  %300 = vrot.lane.b32.xlu0 %v1030_v51, %s876_s0  ;;  %v801_v8 = vpop.eup %800  ;;  %v432_v9 = vadd.f32 1.0, %v799_v2  ;;  %v728_v42 = vmul.f32 -1.442695, %v1075_v14  ;;  %v738_v53 = vmul.f32 -1.442695, %v1087_v23 }
  0xec   :  { %v803_v10 = vpop.eup %802  ;;  %v443_v13 = vadd.f32 1.0, %v801_v8  ;;  %v727_v43 = vmul.f32 -1.442695, %v1078_v15  ;;  %v737_v55 = vmul.f32 -1.442695, %v1090_v26 }
  0xed   :  { %v805_v12 = vpop.eup %804  ;;  %820 = vrcp.f32 %v432_v9  ;;  %v442_v16 = vadd.f32 1.0, %v803_v10 }
  0xee   :  { %v807_v17 = vpop.eup %806  ;;  %v435_v20 = vadd.f32 1.0, %v805_v12  ;;  %822 = vpow2.f32 %v733_v11 }
  0xef   :  { %322 = vrot.lane.b32.xlu1 %v1039_v58, %s876_s0  ;;  %320 = vrot.lane.b32.xlu0 %v1042_v59, %s876_s0  ;;  %v809_v19 = vpop.eup %808  ;;  %824 = vrcp.f32 %v443_v13  ;;  %v434_v27 = vadd.f32 1.0, %v807_v17 }
  0xf0   :  { %826 = vrcp.f32 %v442_v16  ;;  %v811_v28 = vpop.eup %810  ;;  %v445_v29 = vadd.f32 1.0, %v809_v19 }
  0xf1   :  { %828 = vpow2.f32 %v726_v18  ;;  %v813_v32 = vpop.eup %812  ;;  %v444_v38 = vadd.f32 1.0, %v811_v28 }
  0xf2   :  { %830 = vrcp.f32 %v435_v20  ;;  %v815_v35 = vpop.eup %814  ;;  %v437_v40 = vadd.f32 1.0, %v813_v32 }
  0xf3   :  { %306 = vrot.lane.b32.xlu1 %v1051_v62, %s876_s0  ;;  %304 = vrot.lane.b32.xlu0 %v1054_v63, %s876_s0  ;;  %832 = vpow2.f32 %v725_v22  ;;  %v817_v36 = vpop.eup %816  ;;  %v436_v47 = vadd.f32 1.0, %v815_v35 }
  0xf4   :  { %834 = vrcp.f32 %v434_v27  ;;  %v819_v39 = vpop.eup %818  ;;  %v447_v49 = vadd.f32 1.0, %v817_v36 }
  0xf5   :  { %836 = vrcp.f32 %v445_v29 }
  0xf6   :  { %838 = vpow2.f32 %v736_v33 }
  0xf7   :  { %326 = vrot.lane.b32.xlu1 %v1064_v6, %s876_s0  ;;  %324 = vrot.lane.b32.xlu0 %v1067_v7, %s876_s0  ;;  %v821_v41 = vpop.eup %820  ;;  %840 = vpow2.f32 %v735_v21 }
  0xf8   :  { %v823_v46 = vpop.eup %822  ;;  %842 = vrcp.f32 %v444_v38 }
  0xf9   :  { %v825_v48 = vpop.eup %824  ;;  %844 = vrcp.f32 %v437_v40  ;;  %v446_v57 = vadd.f32 1.0, %v823_v46 }
  0xfa   :  { %v827_v52 = vpop.eup %826  ;;  %846 = vpow2.f32 %v728_v42 }
  0xfb   :  { %310 = vrot.lane.b32.xlu1 %v1075_v14, %s876_s0  ;;  %308 = vrot.lane.b32.xlu0 %v1078_v15, %s876_s0  ;;  %v829_v54 = vpop.eup %828  ;;  %848 = vpow2.f32 %v727_v43 }
  0xfc   :  { %v831_v56 = vpop.eup %830  ;;  %850 = vrcp.f32 %v436_v47  ;;  %v439_v1 = vadd.f32 1.0, %v829_v54 }
  0xfd   :  { %v833_v60 = vpop.eup %832  ;;  %852 = vrcp.f32 %v447_v49 }
  0xfe   :  { %v835_v61 = vpop.eup %834  ;;  %854 = vpow2.f32 %v738_v53  ;;  %v438_v3 = vadd.f32 1.0, %v833_v60 }
  0xff   :  { %330 = vrot.lane.b32.xlu1 %v1087_v23, %s876_s0  ;;  %328 = vrot.lane.b32.xlu0 %v1090_v26, %s876_s0  ;;  %v837_v0 = vpop.eup %836  ;;  %856 = vpow2.f32 %v737_v55 }
 0x100   :  { %v839_v2 = vpop.eup %838  ;;  %858 = vrcp.f32 %v446_v57 }
 0x101   :  { %v841_v4 = vpop.eup %840  ;;  %860 = vrcp.f32 %v439_v1  ;;  %v449_v9 = vadd.f32 1.0, %v839_v2 }
 0x102   :  { %v843_v5 = vpop.eup %842  ;;  %862 = vrcp.f32 %v438_v3  ;;  %v448_v11 = vadd.f32 1.0, %v841_v4 }
 0x103   :  { %514 = vrot.lane.b32.xlu1 %v819_v39, %s877_s2  ;;  %512 = vrot.lane.b32.xlu0 %v821_v41, %s877_s2  ;;  %v845_v8 = vpop.eup %844  ;;  %864 = vrcp.f32 %v449_v9 }
 0x104   :  { %v847_v10 = vpop.eup %846  ;;  %866 = vrcp.f32 %v448_v11 }
 0x105   :  { %v849_v12 = vpop.eup %848  ;;  %v441_v17 = vadd.f32 1.0, %v847_v10 }
 0x106   :  { %v851_v13 = vpop.eup %850  ;;  %v440_v19 = vadd.f32 1.0, %v849_v12 }
 0x107   :  { %534 = vrot.lane.b32.xlu1 %v825_v48, %s877_s2  ;;  %532 = vrot.lane.b32.xlu0 %v827_v52, %s877_s2  ;;  %v853_v16 = vpop.eup %852  ;;  %868 = vrcp.f32 %v441_v17 }
 0x108   :  { %v855_v18 = vpop.eup %854  ;;  %870 = vrcp.f32 %v440_v19 }
 0x109   :  { %v857_v20 = vpop.eup %856  ;;  %v451_v27 = vadd.f32 1.0, %v855_v18 }
 0x10a   :  { %v859_v22 = vpop.eup %858  ;;  %v450_v28 = vadd.f32 1.0, %v857_v20 }
 0x10b   :  { %518 = vrot.lane.b32.xlu1 %v831_v56, %s877_s2  ;;  %516 = vrot.lane.b32.xlu0 %v835_v61, %s877_s2  ;;  %v861_v29 = vpop.eup %860  ;;  %872 = vrcp.f32 %v451_v27 }
 0x10c   :  { %v863_v32 = vpop.eup %862  ;;  %874 = vrcp.f32 %v450_v28 }
 0x10d   :  { %v865_v33 = vpop.eup %864 }
 0x10e   :  { %v867_v35 = vpop.eup %866 }
 0x10f   :  { %538 = vrot.lane.b32.xlu1 %v837_v0, %s877_s2  ;;  %536 = vrot.lane.b32.xlu0 %v843_v5, %s877_s2 }
 0x111   :  { %v869_v21 = vpop.eup %868 }
 0x112   :  { %v871_v36 = vpop.eup %870 }
 0x113   :  { %522 = vrot.lane.b32.xlu1 %v845_v8, %s877_s2  ;;  %520 = vrot.lane.b32.xlu0 %v851_v13, %s877_s2 }
 0x115   :  { %v873_v38 = vpop.eup %872 }
 0x116   :  { %v875_v39 = vpop.eup %874 }
 0x117   :  { %542 = vrot.lane.b32.xlu1 %v853_v16, %s877_s2  ;;  %540 = vrot.lane.b32.xlu0 %v859_v22, %s877_s2 }
 0x11b   :  { %526 = vrot.lane.b32.xlu1 %v861_v29, %s877_s2  ;;  %524 = vrot.lane.b32.xlu0 %v863_v32, %s877_s2 }
 0x11f   :  { %546 = vrot.lane.b32.xlu1 %v865_v33, %s877_s2  ;;  %544 = vrot.lane.b32.xlu0 %v867_v35, %s877_s2 }
 0x123   :  { %530 = vrot.lane.b32.xlu1 %v869_v21, %s877_s2  ;;  %528 = vrot.lane.b32.xlu0 %v871_v36, %s877_s2 }
 0x127   :  { %550 = vrot.lane.b32.xlu1 %v873_v38, %s877_s2  ;;  %548 = vrot.lane.b32.xlu0 %v875_v39, %s877_s2 }
 0x14d   :  { %v315_v40 = vpop.permute.xlu1 %314  ;;  %v295_v41 = vpop.permute.xlu0 %294 }
 0x14e   :  { %v353_v4 = vadd.f32 %v295_v41, %v987_v24  ;;  %v363_v12 = vadd.f32 %v315_v40, %v990_v25 }
 0x151   :  { %v299_v42 = vpop.permute.xlu1 %298  ;;  %v293_v43 = vpop.permute.xlu0 %292 }
 0x152   :  { %v352_v5 = vadd.f32 %v293_v43, %v997_v30  ;;  %v355_v24 = vadd.f32 %v299_v42, %v1000_v31 }
 0x155   :  { %v319_v46 = vpop.permute.xlu1 %318  ;;  %v313_v47 = vpop.permute.xlu0 %312 }
 0x156   :  { %v362_v13 = vadd.f32 %v313_v47, %v1010_v37  ;;  %v365_v27 = vadd.f32 %v319_v46, %v1003_v34 }
 0x159   :  { %v297_v48 = vpop.permute.xlu1 %296  ;;  %v317_v49 = vpop.permute.xlu0 %316 }
 0x15a   :  { %v354_v30 = vadd.f32 %v297_v48, %v1019_v44  ;;  %v364_v28 = vadd.f32 %v317_v49, %v1022_v45 }
 0x15d   :  { %v303_v52 = vpop.permute.xlu1 %302  ;;  %v301_v53 = vpop.permute.xlu0 %300 }
 0x15e   :  { %v357_v33 = vadd.f32 %v303_v52, %v1027_v50  ;;  %v356_v35 = vadd.f32 %v301_v53, %v1030_v51 }
 0x161   :  { %v323_v54 = vpop.permute.xlu1 %322  ;;  %v321_v55 = vpop.permute.xlu0 %320 }
 0x162   :  { %v367_v38 = vadd.f32 %v323_v54, %v1039_v58  ;;  %v366_v39 = vadd.f32 %v321_v55, %v1042_v59 }
 0x165   :  { %v307_v56 = vpop.permute.xlu1 %306  ;;  %v305_v57 = vpop.permute.xlu0 %304 }
 0x166   :  { %v359_v42 = vadd.f32 %v307_v56, %v1051_v62  ;;  %v358_v43 = vadd.f32 %v305_v57, %v1054_v63 }
 0x169   :  { %v327_v60 = vpop.permute.xlu1 %326  ;;  %v325_v61 = vpop.permute.xlu0 %324 }
 0x16a   :  { %v369_v48 = vadd.f32 %v327_v60, %v1064_v6  ;;  %v368_v49 = vadd.f32 %v325_v61, %v1067_v7 }
 0x16d   :  { %v1126_v0 = vpop.permute.xlu1 %310  ;;  %v1128_v1 = vpop.permute.xlu0 %308 }
 0x16e   :  { %v361_v54 = vadd.f32 %v1126_v0, %v1075_v14  ;;  %v360_v55 = vadd.f32 %v1128_v1, %v1078_v15 }
 0x171   :  { %v1130_v2 = vpop.permute.xlu1 %330  ;;  %v1132_v3 = vpop.permute.xlu0 %328 }
 0x172   :  { %v371_v60 = vadd.f32 %v1130_v2, %v1087_v23  ;;  %v370_v61 = vadd.f32 %v1132_v3, %v1090_v26 }
 0x175   :  { %v515_v8 = vpop.permute.xlu1 %514  ;;  %v513_v9 = vpop.permute.xlu0 %512 }
 0x176   :  { %v573_v10 = vmul.f32 %v515_v8, %v353_v4  ;;  %v572_v11 = vmul.f32 %v513_v9, %v352_v5 }
 0x178   :  { %614 = vrot.lane.b32.xlu1 %v573_v10, %s877_s2  ;;  %612 = vrot.lane.b32.xlu0 %v572_v11, %s877_s2 }
 0x179   :  { %v535_v16 = vpop.permute.xlu1 %534  ;;  %v533_v17 = vpop.permute.xlu0 %532 }
 0x17a   :  { %v583_v18 = vmul.f32 %v535_v16, %v363_v12  ;;  %v582_v19 = vmul.f32 %v533_v17, %v362_v13 }
 0x17c   :  { %634 = vrot.lane.b32.xlu1 %v583_v18, %s877_s2  ;;  %632 = vrot.lane.b32.xlu0 %v582_v19, %s877_s2 }
 0x17d   :  { %v519_v20 = vpop.permute.xlu1 %518  ;;  %v517_v25 = vpop.permute.xlu0 %516 }
 0x17e   :  { %v575_v22 = vmul.f32 %v519_v20, %v355_v24  ;;  %v574_v37 = vmul.f32 %v517_v25, %v354_v30 }
 0x180   :  { %618 = vrot.lane.b32.xlu1 %v575_v22, %s877_s2  ;;  %616 = vrot.lane.b32.xlu0 %v574_v37, %s877_s2 }
 0x181   :  { %v539_v29 = vpop.permute.xlu1 %538  ;;  %v537_v31 = vpop.permute.xlu0 %536 }
 0x182   :  { %v585_v32 = vmul.f32 %v539_v29, %v365_v27  ;;  %v584_v44 = vmul.f32 %v537_v31, %v364_v28 }
 0x184   :  { %638 = vrot.lane.b32.xlu1 %v585_v32, %s877_s2  ;;  %636 = vrot.lane.b32.xlu0 %v584_v44, %s877_s2 }
 0x185   :  { %v523_v21 = vpop.permute.xlu1 %522  ;;  %v521_v34 = vpop.permute.xlu0 %520 }
 0x186   :  { %v577_v36 = vmul.f32 %v523_v21, %v357_v33  ;;  %v576_v45 = vmul.f32 %v521_v34, %v356_v35 }
 0x188   :  { %622 = vrot.lane.b32.xlu1 %v577_v36, %s877_s2  ;;  %620 = vrot.lane.b32.xlu0 %v576_v45, %s877_s2 }
 0x189   :  { %v543_v40 = vpop.permute.xlu1 %542  ;;  %v541_v50 = vpop.permute.xlu0 %540 }
 0x18a   :  { %v587_v41 = vmul.f32 %v543_v40, %v367_v38  ;;  %v586_v51 = vmul.f32 %v541_v50, %v366_v39 }
 0x18c   :  { %642 = vrot.lane.b32.xlu1 %v587_v41, %s877_s2  ;;  %640 = vrot.lane.b32.xlu0 %v586_v51, %s877_s2 }
 0x18d   :  { %v527_v46 = vpop.permute.xlu1 %526  ;;  %v525_v58 = vpop.permute.xlu0 %524 }
 0x18e   :  { %v579_v47 = vmul.f32 %v527_v46, %v359_v42  ;;  %v578_v59 = vmul.f32 %v525_v58, %v358_v43 }
 0x190   :  { %626 = vrot.lane.b32.xlu1 %v579_v47, %s877_s2  ;;  %624 = vrot.lane.b32.xlu0 %v578_v59, %s877_s2 }
 0x191   :  { %v547_v52 = vpop.permute.xlu1 %546  ;;  %v545_v62 = vpop.permute.xlu0 %544 }
 0x192   :  { %v589_v53 = vmul.f32 %v547_v52, %v369_v48  ;;  %v588_v63 = vmul.f32 %v545_v62, %v368_v49 }
 0x194   :  { %646 = vrot.lane.b32.xlu1 %v589_v53, %s877_s2  ;;  %644 = vrot.lane.b32.xlu0 %v588_v63, %s877_s2 }
 0x195   :  { %v531_v6 = vpop.permute.xlu1 %530  ;;  %v529_v7 = vpop.permute.xlu0 %528 }
 0x196   :  { %v581_v56 = vmul.f32 %v531_v6, %v361_v54  ;;  %v580_v57 = vmul.f32 %v529_v7, %v360_v55 }
 0x198   :  { %630 = vrot.lane.b32.xlu1 %v581_v56, %s877_s2  ;;  %628 = vrot.lane.b32.xlu0 %v580_v57, %s877_s2 }
 0x199   :  { %v551_v14 = vpop.permute.xlu1 %550  ;;  %v549_v15 = vpop.permute.xlu0 %548 }
 0x19a   :  { %v591_v0 = vmul.f32 %v551_v14, %v371_v60  ;;  %v590_v1 = vmul.f32 %v549_v15, %v370_v61 }
 0x19c   :  { %650 = vrot.lane.b32.xlu1 %v591_v0, %s877_s2  ;;  %648 = vrot.lane.b32.xlu0 %v590_v1, %s877_s2 }
 0x1ea   :  { %v615_v4 = vpop.permute.xlu1 %614  ;;  %v613_v5 = vpop.permute.xlu0 %612 }
 0x1eb   :  { %674 = vst.msk [vmem:[%s1261_s3 + $0x8] sm:$0xff] %vm672_vm2, %v615_v4  ;;  %673 = vst.msk [vmem:[%s1261_s3] sm:$0xff] %vm672_vm2, %v613_v5 }
 0x1ee   :  { %v635_v23 = vpop.permute.xlu1 %634  ;;  %v633_v26 = vpop.permute.xlu0 %632 }
 0x1ef   :  { %684 = vst.msk [vmem:[%s1261_s3 + $0x58] sm:$0xff] %vm672_vm2, %v635_v23  ;;  %683 = vst.msk [vmem:[%s1261_s3 + $0x50] sm:$0xff] %vm672_vm2, %v633_v26 }
 0x1f2   :  { %v619_v2 = vpop.permute.xlu1 %618  ;;  %v617_v3 = vpop.permute.xlu0 %616 }
 0x1f3   :  { %676 = vst.msk [vmem:[%s1261_s3 + $0x18] sm:$0xff] %vm672_vm2, %v619_v2  ;;  %675 = vst.msk [vmem:[%s1261_s3 + $0x10] sm:$0xff] %vm672_vm2, %v617_v3 }
 0x1f6   :  { %v639_v8 = vpop.permute.xlu1 %638  ;;  %v637_v9 = vpop.permute.xlu0 %636 }
 0x1f7   :  { %686 = vst.msk [vmem:[%s1261_s3 + $0x68] sm:$0xff] %vm672_vm2, %v639_v8  ;;  %685 = vst.msk [vmem:[%s1261_s3 + $0x60] sm:$0xff] %vm672_vm2, %v637_v9 }
 0x1fa   :  { %v623_v10 = vpop.permute.xlu1 %622  ;;  %v621_v11 = vpop.permute.xlu0 %620 }
 0x1fb   :  { %678 = vst.msk [vmem:[%s1261_s3 + $0x28] sm:$0xff] %vm672_vm2, %v623_v10  ;;  %677 = vst.msk [vmem:[%s1261_s3 + $0x20] sm:$0xff] %vm672_vm2, %v621_v11 }
 0x1fe   :  { %v643_v12 = vpop.permute.xlu1 %642  ;;  %v641_v13 = vpop.permute.xlu0 %640 }
 0x1ff   :  { %688 = vst.msk [vmem:[%s1261_s3 + $0x78] sm:$0xff] %vm672_vm2, %v643_v12  ;;  %687 = vst.msk [vmem:[%s1261_s3 + $0x70] sm:$0xff] %vm672_vm2, %v641_v13 }
 0x202   :  { %v627_v16 = vpop.permute.xlu1 %626  ;;  %v625_v17 = vpop.permute.xlu0 %624 }
 0x203   :  { %680 = vst.msk [vmem:[%s1261_s3 + $0x38] sm:$0xff] %vm672_vm2, %v627_v16  ;;  %679 = vst.msk [vmem:[%s1261_s3 + $0x30] sm:$0xff] %vm672_vm2, %v625_v17 }
 0x206   :  { %v647_v18 = vpop.permute.xlu1 %646  ;;  %v645_v19 = vpop.permute.xlu0 %644 }
 0x207   :  { %690 = vst.msk [vmem:[%s1261_s3 + $0x88] sm:$0xff] %vm672_vm2, %v647_v18  ;;  %689 = vst.msk [vmem:[%s1261_s3 + $0x80] sm:$0xff] %vm672_vm2, %v645_v19 }
 0x20a   :  { %v631_v24 = vpop.permute.xlu1 %630  ;;  %v629_v30 = vpop.permute.xlu0 %628 }
 0x20b   :  { %682 = vst.msk [vmem:[%s1261_s3 + $0x48] sm:$0xff] %vm672_vm2, %v631_v24  ;;  %681 = vst.msk [vmem:[%s1261_s3 + $0x40] sm:$0xff] %vm672_vm2, %v629_v30 }
 0x20e   :  { %v651_v20 = vpop.permute.xlu1 %650  ;;  %v649_v25 = vpop.permute.xlu0 %648 }
 0x20f   :  { %692 = vst.msk [vmem:[%s1261_s3 + $0x98] sm:$0xff] %vm672_vm2, %v651_v20  ;;  %691 = vst.msk [vmem:[%s1261_s3 + $0x90] sm:$0xff] %vm672_vm2, %v649_v25 }

</bundles_post_ra>
